<compile_context>
chip_gen: v6e
topology: v6e:2x2x1
jax: 0.10.0
libtpu: 0.0.40
codegen_flags: <defaults>
</compile_context>

<pallas_src>
import functools

import jax
import jax.numpy as jnp
from jax.experimental import pallas as pl
from jax.experimental.pallas import tpu as pltpu

COND_EMB_DIM = 8
HIDDEN_SIZE = 32     # small synthetic size for the self-test (module default is 256)
LATENT_LEN = 32
BATCH = 2

_LANE = 128          # lane width (last-dim tiling unit)
_SUBLANE = 16        # sublane rounding for the batch tile (16 covers bf16 and f32 operands)

# jax renamed TPUCompilerParams -> CompilerParams; accept either, degrade gracefully.
_CompilerParams = getattr(pltpu, "CompilerParams", None) or getattr(
    pltpu, "TPUCompilerParams", None)


def _round_up(x, m):
    return ((x + m - 1) // m) * m


def _reparam_kernel(x_ref, w_ref, b_ref, eps_ref, out_ref):
    """out <- [mean | logvar | sample] packed lane-dense (real columns only, zero tail)."""
    l_pad = w_ref.shape[1] // 2          # per-head padded width (multiple of 128)
    n_lat = eps_ref.shape[1]             # real latent length L

    # One fused MXU matmul: [mean | logvar] = x @ [Wm | Wv] + [bm | bv]  (bf16 in, f32 acc).
    fused = jnp.dot(x_ref[...], w_ref[...],
                    preferred_element_type=jnp.float32) + b_ref[...]
    mean = fused[:, :l_pad]
    logvar = fused[:, l_pad:]

    std = jnp.exp(logvar * 0.5)                                   # EUP
    sample = eps_ref[...] * std[:, :n_lat] + mean[:, :n_lat]      # VPU FMA

    # Lane-dense packed store: single output stream, only the real latent columns.
    parts = [mean[:, :n_lat], logvar[:, :n_lat], sample]
    tail = out_ref.shape[1] - 3 * n_lat
    if tail:
        parts.append(jnp.zeros((out_ref.shape[0], tail), jnp.float32))
    out_ref[...] = jnp.concatenate(parts, axis=-1)


def prepare_reparame_params(wm, bm, wv, bv):
    """One-time parameter prep (hoisted out of the per-call forward).

    wm/wv: (D, L) in x@W layout; bm/bv: (1, L).
    Returns fused bf16 weight (D, 2*l_pad) and fused f32 bias (1, 2*l_pad):
    columns [0:L] = mean head, columns [l_pad:l_pad+L] = logvar head.
    """
    d_in, n_lat = wm.shape
    l_pad = _round_up(n_lat, _LANE)
    w_cat = jnp.zeros((d_in, 2 * l_pad), jnp.bfloat16)
    w_cat = w_cat.at[:, :n_lat].set(wm.astype(jnp.bfloat16))
    w_cat = w_cat.at[:, l_pad:l_pad + n_lat].set(wv.astype(jnp.bfloat16))
    b_cat = jnp.zeros((1, 2 * l_pad), jnp.float32)
    b_cat = b_cat.at[:, :n_lat].set(bm.astype(jnp.float32))
    b_cat = b_cat.at[:, l_pad:l_pad + n_lat].set(bv.astype(jnp.float32))
    return w_cat, b_cat


@functools.partial(jax.jit, static_argnames=("block_m",))
def reparame_forward(x, w_cat, b_cat, eps, *, block_m=512):
    """x: (B, D); w_cat/b_cat from prepare_reparame_params; eps: (B, L) ~ N(0,1).

    Returns (mean, logvar, sample), each (B, L) float32 -- same as Reparame.forward.
    """
    n_batch, d_in = x.shape
    n_lat = eps.shape[1]
    l_pad = w_cat.shape[1] // 2
    out_pad = _round_up(3 * n_lat, _LANE)      # packed [mean|logvar|sample] output width

    # Batch tile: big (per-grid-step overhead dominates this light kernel), but capped so the
    # "parallel" grid axis has >= 2 steps when the batch allows -> both v7x TensorCores run.
    b_sub = _round_up(n_batch, _SUBLANE)
    tm = min(block_m, b_sub)
    if tm == b_sub and b_sub >= 2 * _SUBLANE:
        tm = _round_up((b_sub + 1) // 2, _SUBLANE)
    b_pad = _round_up(n_batch, tm)

    x_bf = x.astype(jnp.bfloat16)              # half the input DMA bytes; MXU-native operand
    eps = eps.astype(jnp.float32)
    if b_pad != n_batch:
        pad = ((0, b_pad - n_batch), (0, 0))
        x_bf = jnp.pad(x_bf, pad)
        eps = jnp.pad(eps, pad)

    grid = (b_pad // tm,)

    cost = pl.CostEstimate(
        flops=2 * b_pad * d_in * (2 * l_pad) + 4 * b_pad * l_pad,
        transcendentals=b_pad * l_pad,         # exp
        bytes_accessed=(x_bf.size * 2 + w_cat.size * 2 + b_cat.size * 4
                        + eps.size * 4 + b_pad * out_pad * 4),
    )
    compiler_params = (_CompilerParams(dimension_semantics=("parallel",))
                       if _CompilerParams is not None else None)

    packed = pl.pallas_call(
        _reparam_kernel,
        out_shape=jax.ShapeDtypeStruct((b_pad, out_pad), jnp.float32),
        grid=grid,
        in_specs=[
            pl.BlockSpec((tm, d_in), lambda i: (i, 0)),          # x batch tile (bf16)
            pl.BlockSpec((d_in, 2 * l_pad), lambda i: (0, 0)),   # fused W, VMEM-resident
            pl.BlockSpec((1, 2 * l_pad), lambda i: (0, 0)),      # fused bias, VMEM-resident
            pl.BlockSpec((tm, n_lat), lambda i: (i, 0)),         # eps batch tile
        ],
        out_specs=pl.BlockSpec((tm, out_pad), lambda i: (i, 0)),
        compiler_params=compiler_params,
        cost_estimate=cost,
    )(x_bf, w_cat, b_cat, eps)

    mean = packed[:n_batch, :n_lat]
    logvar = packed[:n_batch, n_lat:2 * n_lat]
    sample = packed[:n_batch, 2 * n_lat:3 * n_lat]
    return mean, logvar, sample


def _init_linear(key, in_dim, out_dim):
    """Deterministic init mimicking nn.Linear default (uniform in +-1/sqrt(in_dim))."""
    k_w, k_b = jax.random.split(key)
    bound = 1.0 / jnp.sqrt(in_dim)
    w = jax.random.uniform(k_w, (in_dim, out_dim), jnp.float32, -bound, bound)
    b = jax.random.uniform(k_b, (1, out_dim), jnp.float32, -bound, bound)
    return w, b


if __name__ == "__main__":
    key = jax.random.PRNGKey(0)
    k_x, k_m, k_v, k_e = jax.random.split(key, 4)

    d_in = COND_EMB_DIM + HIDDEN_SIZE
    x = jax.random.normal(k_x, (BATCH, d_in), jnp.float32)
    wm, bm = _init_linear(k_m, d_in, LATENT_LEN)
    wv, bv = _init_linear(k_v, d_in, LATENT_LEN)
    # eps plays the role of torch.randn_like(std); drawn host-side, passed to the kernel.
    eps = jax.random.normal(k_e, (BATCH, LATENT_LEN), jnp.float32)

    w_cat, b_cat = prepare_reparame_params(wm, bm, wv, bv)   # one-time parameter prep
    mean, logvar, sample = reparame_forward(x, w_cat, b_cat, eps)
    jax.block_until_ready((mean, logvar, sample))

    # Reference in plain JAX.  The kernel matmul runs bf16 x bf16 with an f32 accumulate
    # (MXU-native), so the reference uses the same operand precision.
    xb = x.astype(jnp.bfloat16)
    ref_mean = jnp.dot(xb, wm.astype(jnp.bfloat16), preferred_element_type=jnp.float32) + bm
    ref_logvar = jnp.dot(xb, wv.astype(jnp.bfloat16), preferred_element_type=jnp.float32) + bv
    ref_sample = eps * jnp.exp(ref_logvar / 2.0) + ref_mean

    assert mean.shape == (BATCH, LATENT_LEN) and sample.shape == (BATCH, LATENT_LEN)
    assert jnp.allclose(mean, ref_mean, atol=1e-3), float(jnp.max(jnp.abs(mean - ref_mean)))
    assert jnp.allclose(logvar, ref_logvar, atol=1e-3), float(jnp.max(jnp.abs(logvar - ref_logvar)))
    assert jnp.allclose(sample, ref_sample, atol=2e-3), float(jnp.max(jnp.abs(sample - ref_sample)))

    print("KERNEL_OK")
</pallas_src>

<mosaic_0001>
module attributes {stable_mosaic.version = 11 : i64} {
  func.func @_reparam_kernel(%arg0: i32, %arg1: memref<16x40xbf16, #tpu.memory_space<vmem>>, %arg2: memref<40x256xbf16, #tpu.memory_space<vmem>>, %arg3: memref<1x256xf32, #tpu.memory_space<vmem>>, %arg4: memref<16x32xf32, #tpu.memory_space<vmem>>, %arg5: memref<16x128xf32, #tpu.memory_space<vmem>>) attributes {dimension_semantics = [#tpu.dimension_semantics<parallel>], iteration_bounds = array<i64: 1>, scalar_prefetch = 0 : i64, scratch_operands = 0 : i64, tpu.core_type = #tpu.core_type<tc>, window_params = [{transform_indices = @transform_0, window_bounds = array<i64: 16, 40>}, {pipeline_mode = #tpu.pipeline_mode<synchronous>, transform_indices = @transform_1, window_bounds = array<i64: 40, 256>}, {pipeline_mode = #tpu.pipeline_mode<synchronous>, transform_indices = @transform_2, window_bounds = array<i64: 1, 256>}, {transform_indices = @transform_3, window_bounds = array<i64: 16, 32>}, {transform_indices = @transform_4, window_bounds = array<i64: 16, 128>}]} {
    %c0 = arith.constant 0 : index
    %c0_0 = arith.constant 0 : index
    %0 = vector.load %arg1[%c0, %c0_0] : memref<16x40xbf16, #tpu.memory_space<vmem>>, vector<16x40xbf16>
    %c0_1 = arith.constant 0 : index
    %c0_2 = arith.constant 0 : index
    %1 = vector.load %arg2[%c0_1, %c0_2] : memref<40x256xbf16, #tpu.memory_space<vmem>>, vector<40x256xbf16>
    %cst = arith.constant dense<0.000000e+00> : vector<16x256xf32>
    %2 = tpu.matmul %0, %1, %cst {dimension_numbers = #tpu.dot_dimension_numbers<[1], [0], [0], [1], [0, 0, 1, 1], [], []>} : vector<16x40xbf16>, vector<40x256xbf16>, vector<16x256xf32> -> vector<16x256xf32>
    %c0_3 = arith.constant 0 : index
    %c0_4 = arith.constant 0 : index
    %3 = vector.load %arg3[%c0_3, %c0_4] : memref<1x256xf32, #tpu.memory_space<vmem>>, vector<1x256xf32>
    %4 = vector.broadcast %3 : vector<1x256xf32> to vector<16x256xf32>
    %5 = arith.addf %2, %4 : vector<16x256xf32>
    %6 = vector.extract_strided_slice %5 {offsets = [0, 0], sizes = [16, 128], strides = [1, 1]} : vector<16x256xf32> to vector<16x128xf32>
    %7 = vector.extract_strided_slice %5 {offsets = [0, 128], sizes = [16, 128], strides = [1, 1]} : vector<16x256xf32> to vector<16x128xf32>
    %cst_5 = arith.constant 5.000000e-01 : f32
    %8 = vector.broadcast %cst_5 : f32 to vector<16x128xf32>
    %9 = arith.mulf %7, %8 : vector<16x128xf32>
    %10 = math.exp %9 : vector<16x128xf32>
    %c0_6 = arith.constant 0 : index
    %c0_7 = arith.constant 0 : index
    %11 = vector.load %arg4[%c0_6, %c0_7] : memref<16x32xf32, #tpu.memory_space<vmem>>, vector<16x32xf32>
    %12 = vector.extract_strided_slice %10 {offsets = [0, 0], sizes = [16, 32], strides = [1, 1]} : vector<16x128xf32> to vector<16x32xf32>
    %13 = arith.mulf %11, %12 : vector<16x32xf32>
    %14 = vector.extract_strided_slice %6 {offsets = [0, 0], sizes = [16, 32], strides = [1, 1]} : vector<16x128xf32> to vector<16x32xf32>
    %15 = arith.addf %13, %14 : vector<16x32xf32>
    %16 = vector.extract_strided_slice %6 {offsets = [0, 0], sizes = [16, 32], strides = [1, 1]} : vector<16x128xf32> to vector<16x32xf32>
    %17 = vector.extract_strided_slice %7 {offsets = [0, 0], sizes = [16, 32], strides = [1, 1]} : vector<16x128xf32> to vector<16x32xf32>
    %cst_8 = arith.constant 0.000000e+00 : f32
    %18 = vector.broadcast %cst_8 : f32 to vector<16x32xf32>
    %19 = tpu.concatenate %16, %17, %15, %18 in 1 : vector<16x32xf32>, vector<16x32xf32>, vector<16x32xf32>, vector<16x32xf32> -> vector<16x128xf32>
    %c0_9 = arith.constant 0 : index
    %c0_10 = arith.constant 0 : index
    %20 = vector.load %arg5[%c0_9, %c0_10] : memref<16x128xf32, #tpu.memory_space<vmem>>, vector<16x128xf32>
    tpu.vector_store %arg5[%c0_9, %c0_10], %19 {strides = array<i32>} : memref<16x128xf32, #tpu.memory_space<vmem>>, vector<16x128xf32>,
    return
  }
  func.func @transform_0(%arg0: i32) -> (i32, i32) {
    %c0_i32 = arith.constant 0 : i32
    %c0_i32_0 = arith.constant 0 : i32
    return %arg0, %c0_i32 : i32, i32
  }
  func.func @transform_1(%arg0: i32) -> (i32, i32) {
    %c0_i32 = arith.constant 0 : i32
    %c0_i32_0 = arith.constant 0 : i32
    %c0_i32_1 = arith.constant 0 : i32
    return %c0_i32, %c0_i32_0 : i32, i32
  }
  func.func @transform_2(%arg0: i32) -> (i32, i32) {
    %c0_i32 = arith.constant 0 : i32
    %c0_i32_0 = arith.constant 0 : i32
    %c0_i32_1 = arith.constant 0 : i32
    return %c0_i32, %c0_i32_0 : i32, i32
  }
  func.func @transform_3(%arg0: i32) -> (i32, i32) {
    %c0_i32 = arith.constant 0 : i32
    %c0_i32_0 = arith.constant 0 : i32
    return %arg0, %c0_i32 : i32, i32
  }
  func.func @transform_4(%arg0: i32) -> (i32, i32) {
    %c0_i32 = arith.constant 0 : i32
    %c0_i32_0 = arith.constant 0 : i32
    return %arg0, %c0_i32 : i32, i32
  }
}

</mosaic_0001>

<bundles_post_ra>
// kernel: reparame_forward.1
= control target key start
LH: loop header
LB: loop body
LE: loop exit
PB: predicated region body
PF: predicated region fallthrough
CT: control target
= control target key end

     0   :  { %9 = vsyncpa [#allocation3], 0  ;;  %s229_s15 = smov [#allocation2]   ;;  %s281_s0 = inlined_call_operand.vmem [shape: bf16[16,40], index: 0, kind: input, shape index: {}]   ;;  %s282_s1 = inlined_call_operand.hbm [shape: bf16[40,256], index: 1, kind: input, shape index: {}]   ;;  %s283_s2 = inlined_call_operand.vmem [shape: f32[1,256], index: 2, kind: input, shape index: {}]   ;;  %s284_s3 = inlined_call_operand.vmem [shape: f32[16,32], index: 3, kind: input, shape index: {}]   ;;  %s285_s4 = inlined_call_operand.vmem [shape: f32[16,128], index: 4, kind: output, shape index: {}]  }
   0x1   :  { %s17_s16 = sshll.u32 %s229_s15, 4  ;;  %s18_s16 = int_to_ptr.vmem [resolvable:$true] %s17_s16 }
   0x2   :  { %s215_s17 = scalar_lea.vmem %s18_s16, 640  ;;  %p220_p1 = scmp.lt.s32.totalorder %s18_s16, %s18_s16 }
   0x3   :  { %p216_p0 = scmp.ne.s32.totalorder %s18_s16, %s215_s17  ;;  %p221_p2 = scmp.lt.s32.totalorder %s215_s17, %s215_s17 }
   0x5   :  { %p222_p3 = por %p221_p2, %p220_p1 }
   0x7   :  { %p223_p4 = pnand %p222_p3, %p216_p0 }
   0x9   :  { %226 = shalt.err (!%p223_p4)
}
   0xa   :  { %s230_s18 = smov 128   ;;  %s231_s19 = smov 8  }
   0xb   :  { %23 = dma.hbm_to_vmem [thread:$0]  %s282_s1, 640, %s18_s16, [#allocation3], %s230_s18, %s230_s18, %s231_s19  }
   0xc   :  { %227 = dma.done.wait [#allocation3], 640  }
   0xd   :  { %228 = vsyncadd [#allocation3], 4294966656  ;;  %v232_v0 = vmov 0   ;;  %v38_v1 = vld [vmem:[#allocation2 + $0x20] sm:$0xff]  ;;  %vm85_vm0 = vcmask 1043456   ;;  %vm81_vm1 = vcmask 326656   ;;  %v41_v10 = vlaneseq }
   0xe   :  { %124 = vmatprep.mubr.bf16.mxu0 %v232_v0  ;;  %v185_v2 = vcombine.high %v38_v1, %v38_v1  ;;  %v184_v3 = vcombine.low %v38_v1, %v38_v1  ;;  %v196_v4 = vld [vmem:[#allocation2 + $0x14] ss:$8 sps:$4 sm:$0xff]   ;;  %v198_v6 = vld [vmem:[#allocation2 + $0x10] ss:$8 sps:$4 sm:$0xff]   ;;  %v199_v7 = vld [vmem:[#allocation2 + $0x4] ss:$8 sps:$4 sm:$0xff]  }
   0xf   :  { %v201_v8 = vld [vmem:[#allocation2] ss:$8 sps:$4 sm:$0xff]   ;;  %v42_v11 = vshrl.u32 %v41_v10, 7  ;;  %s233_s25 = smov 32   ;;  %s234_s28 = smov 64   ;;  %vm163_vm2 = vcmask 261120  }
  0x10   :  { %186 = vmatprep.subr.msk.bf16.mxu0 %vm85_vm0, %v185_v2  ;;  %v87_v5 = vsel %vm85_vm0, %v184_v3, 0  ;;  %v202_v9 = vld [vmem:[%s281_s0] sm:$0xff]   ;;  %v142_v31 = vld [vmem:[%s284_s3 + $0x8] sm:$0xff]  ;;  %vm166_vm3 = vcmask 523264   ;;  %vm169_vm4 = vcmask 785408  }
  0x11   :  { %103 = vmatpush1.bf16.msra.mxu0 %v87_v5  ;;  %v47_v12 = vsub.s32 1, %v42_v11  ;;  %v39_v13 = vld [vmem:[%s283_s2] sm:$0x3]  ;;  %v43_v25 = vsub.s32 0, %v42_v11 }
  0x12   :  { %104 = vmatprep.subr.bf16.mxu0 %v196_v4  ;;  %v141_v27 = vld [vmem:[%s284_s3] sm:$0xff] }
  0x13   :  { %v48_v14 = vrot.slane %v39_v13, %v47_v12  ;;  %v44_v26 = vrot.slane %v39_v13, %v43_v25 }
  0x15   :  { %105 = vmatpush1.bf16.msra.mxu0 %v198_v6 }
  0x16   :  { %106 = vmatprep.subr.bf16.mxu0 %v199_v7 }
  0x19   :  { %107 = vmatpush1.bf16.msra.mxu0 %v201_v8 }
  0x1c   :  { %187 = vmatmul.mubr.msk.bf16.vlgmr.msra.gmra.mxu0 %vm81_vm1, %v202_v9 }
  0xdc   :  { %v126_v15 = vpop.f32.mrf.mxu0 }
  0xdd   :  { %v127_v29 = vadd.f32 %v126_v15, %v44_v26 }
  0xde   :  { %v128_v16 = vpop.f32.mrf.mxu0 }
  0xdf   :  { %v129_v17 = vadd.f32 %v128_v16, %v48_v14 }
  0xe0   :  { %v130_v18 = vpop.f32.mrf.mxu0 }
  0xe1   :  { %v135_v19 = vmul.f32 0.5, %v129_v17  ;;  %149 = vrot.lane.b32.xlu0 %v129_v17, %s233_s25  ;;  %v131_v34 = vadd.f32 %v130_v18, %v44_v26 }
  0xe2   :  { %v132_v20 = vpop.f32.mrf.mxu0 }
  0xe3   :  { %v137_v21 = vmul.f32 1.442695, %v135_v19  ;;  %v133_v22 = vadd.f32 %v132_v20, %v48_v14 }
  0xe5   :  { %203 = vpow2.f32 %v137_v21  ;;  %v136_v23 = vmul.f32 0.5, %v133_v22  ;;  %151 = vrot.lane.b32.xlu0 %v133_v22, %s233_s25 }
  0xe7   :  { %v139_v24 = vmul.f32 1.442695, %v136_v23 }
  0xe9   :  { %205 = vpow2.f32 %v139_v24 }
  0xf2   :  { %v204_v28 = vpop.eup %203 }
  0xf3   :  { %v143_v30 = vmul.f32 %v204_v28, %v141_v27 }
  0xf5   :  { %v145_v32 = vadd.f32 %v143_v30, %v127_v29 }
  0xf6   :  { %v206_v33 = vpop.eup %205 }
  0xf7   :  { %157 = vrot.lane.b32.xlu1 %v145_v32, %s234_s28  ;;  %v144_v35 = vmul.f32 %v206_v33, %v142_v31 }
  0xf9   :  { %v146_v36 = vadd.f32 %v144_v35, %v131_v34 }
  0xfb   :  { %159 = vrot.lane.b32.xlu1 %v146_v36, %s234_s28 }
 0x153   :  { %v150_v37 = vpop.permute.xlu0 %149 }
 0x154   :  { %v164_v38 = vsel %vm163_vm2, %v127_v29, %v150_v37 }
 0x157   :  { %v152_v40 = vpop.permute.xlu0 %151 }
 0x158   :  { %v165_v43 = vsel %vm163_vm2, %v131_v34, %v152_v40 }
 0x169   :  { %v158_v39 = vpop.permute.xlu1 %157 }
 0x16a   :  { %v167_v41 = vsel %vm166_vm3, %v164_v38, %v158_v39 }
 0x16b   :  { %v170_v42 = vsel %vm169_vm4, %v167_v41, 0.0 }
 0x16c   :  { %172 = vst [vmem:[%s285_s4] sm:$0xff] %v170_v42 }
 0x16d   :  { %v160_v44 = vpop.permute.xlu1 %159 }
 0x16e   :  { %v168_v45 = vsel %vm166_vm3, %v165_v43, %v160_v44 }
 0x16f   :  { %v171_v46 = vsel %vm169_vm4, %v168_v45, 0.0 }
 0x170   :  { %173 = vst [vmem:[%s285_s4 + $0x8] sm:$0xff] %v171_v46 }
 0x171   :  { %178 = vsyncpa [#allocation3], 1 }

</bundles_post_ra>
